<compile_context>
chip_gen: v7x
topology: tpu7x:2x2x1
jax: 0.10.0
libtpu: 0.0.40
codegen_flags: <defaults>
</compile_context>

<pallas_src>
from functools import partial

import numpy as np
import jax
import jax.numpy as jnp
from jax import lax
from jax.experimental import pallas as pl
from jax.experimental.pallas import tpu as pltpu


# ----------------------------------------------------------------------------
# PixelCNN channel/spatial mask (exactly mirrors MaskedConv2d.__init__)
# ----------------------------------------------------------------------------
def _build_pixelcnn_mask(out_c, in_c, kh, kw, mask_type, data_channels):
    yc, xc = kh // 2, kw // 2
    mask = np.zeros((out_c, in_c, kh, kw), dtype=np.float32)
    mask[:, :, :yc, :] = 1.0
    mask[:, :, yc, :xc + 1] = 1.0

    def cmask(o, i):
        a = (np.arange(out_c) % data_channels == o)[:, None]
        b = (np.arange(in_c) % data_channels == i)[None, :]
        return a * b

    for o in range(data_channels):
        for i in range(o + 1, data_channels):
            mask[cmask(o, i), yc, xc] = 0.0
    if mask_type == 'A':
        for c in range(data_channels):
            mask[cmask(c, c), yc, xc] = 0.0
    return mask


# ----------------------------------------------------------------------------
# Generation-aware batch folding
# ----------------------------------------------------------------------------
def _batches_per_step(batch):
    """1 batch/step on multi-TensorCore chips (feed both cores via the 'parallel'
    grid axis); otherwise fold the whole batch into the lane axis so a single-TC
    chip (v5e/v6e) pays the fixed per-grid-step overhead exactly once."""
    kind = ""
    try:
        kind = jax.devices()[0].device_kind.lower()
    except Exception:
        pass
    multi_tc = any(s in kind for s in ("v7", "7x", "v4", "v5p"))
    return 1 if (multi_tc and batch > 1) else batch


# ----------------------------------------------------------------------------
# Fused Pallas kernel + wrapper
# ----------------------------------------------------------------------------
def causal_block_pallas(x_nchw, params, *, kernel_size, out_channels):
    bs = _batches_per_step(x_nchw.shape[0])
    return _causal_block_fused(x_nchw, params, kernel_size=kernel_size,
                               out_channels=out_channels, batches_per_step=bs)


@partial(jax.jit, static_argnames=("kernel_size", "out_channels", "batches_per_step"))
def _causal_block_fused(x_nchw, params, *, kernel_size, out_channels, batches_per_step):
    B, Cin, H, W = x_nchw.shape
    Co = out_channels
    k = kernel_size
    assert k % 2 == 1, "odd kernel_size expected (module uses padding=k//2)"
    kh = k // 2 + 1                  # vertical-stack kernel height
    pw = k // 2                      # horizontal padding
    Wp = W + 2 * pw                  # padded width
    HWp = H * Wp                     # flattened pixel columns (width-padded)
    ndy = kh + 1                     # tap rows: d=0..kh  (shifted: 0..kh-1, res: 1..kh, h/fc: kh)
    Cp = max(8, -(-Cin // 8) * 8)    # channels padded to a sublane multiple
    Kt = ndy * k * Cp                # im2col contraction size
    f32 = jnp.float32

    bs = batches_per_step
    assert B % bs == 0
    G = B // bs

    # Lane-dense padding: N and the output slab rounded to multiples of 128 so every
    # store / matmul stream is an unmasked full vreg.
    Npad = -(-HWp // 128) * 128
    max_off = kh * Wp + (k - 1)                  # largest im2col tap offset
    Lpad = -(-(max_off + Npad) // 128) * 128     # input slab lane length (>= all tap reads)

    # --- activation slab: zeros everywhere, input rows placed at xpad rows kh..kh+H-1
    #     (kh causal top-pad rows), width padded by pw each side, channels padded to Cp.
    # TODO(synk): at production sizes build this slab in-kernel (memory_space=pl.ANY
    # input + make_async_copy into a zeroed VMEM scratch) to avoid the extra HBM
    # read+write of the activation; negligible at 2x4x16x16.
    xw = jnp.pad(x_nchw.astype(f32), ((0, 0), (0, 0), (0, 0), (pw, pw)))   # (B,Cin,H,Wp)
    slab = jnp.zeros((B, Cp, Lpad), f32)
    slab = slab.at[:, :Cin, kh * Wp:(kh + H) * Wp].set(xw.reshape(B, Cin, HWp))

    # --- pack weights -----------------------------------------------------------
    # Tap (d, dx) at output column (pixel row p, padded col j) reads
    #   xpad[row p + d, col j + dx]  =  input[row p + d - kh, col j + dx - pw].
    #   shifted (v_conv @ conv-row p) -> d = dky          (dky = 0..kh-1)
    #   res     (v_conv @ conv-row p+1) -> d = dky + 1
    #   h_conv / v_fc (input row p)     -> d = kh
    wv   = params['v_conv_w'].astype(f32)               # (2Co, Cin, kh, k)
    wvfc = params['v_fc_w'][:, :, 0, 0].astype(f32)     # (2Co, Cin)
    wvth = params['v_to_h_w'][:, :, 0, 0].astype(f32)   # (2Co, 2Co)
    wh   = params['h_conv_w'][:, :, 0, :].astype(f32)   # (2Co, Cin, k)  mask pre-applied
    whfc = params['h_fc_w'][:, :, 0, 0].astype(f32)     # (Co, Co)       mask pre-applied
    bv, bvfc, bvth, bh, bhfc = (params[n].astype(f32) for n in
                                ('v_conv_b', 'v_fc_b', 'v_to_h_b', 'h_conv_b', 'h_fc_b'))

    # Row block V [0:2Co]  = v_pre = v_conv(res taps) + v_fc           (+ bv + bvfc)
    WV = jnp.zeros((2 * Co, ndy, k, Cp), f32)
    WV = WV.at[:, 1:1 + kh, :, :Cin].add(jnp.transpose(wv, (0, 2, 3, 1)))
    WV = WV.at[:, kh, pw, :Cin].add(wvfc)

    # Row block H [2Co:4Co] = h_pre = h_conv + (wvth @ v_conv)(shifted taps)
    #                                (+ bh + bvth + wvth @ bv)
    WH = jnp.zeros((2 * Co, ndy, k, Cp), f32)
    WH = WH.at[:, kh, :, :Cin].add(jnp.transpose(wh, (0, 2, 1)))
    WH = WH.at[:, 0:kh, :, :Cin].add(jnp.einsum('oq,qcyx->oyxc', wvth, wv))

    w_big = jnp.concatenate([WV.reshape(2 * Co, Kt), WH.reshape(2 * Co, Kt)], axis=0)
    b_big = jnp.concatenate([bv + bvfc, bh + bvth + wvth @ bv])[:, None]    # (4Co, 1)
    w_small = whfc                                                          # (Co, Co)
    b_small = bhfc[:, None]                                                 # (Co, 1)

    # Width-wraparound invariant: a tap with dx>0 at padded output column j reads into
    # the next slab row only when j + dx >= Wp, i.e. j >= Wp-(k-1) = W.  Those columns
    # (and lanes >= H*Wp) are stripped by the wrapper below — do not change the strip
    # or pw without re-checking this.
    assert Wp - (k - 1) == W

    def kernel(x_ref, wbig_ref, bbig_ref, wsml_ref, bsml_ref, out_ref, xim_ref):
        # im2col: static lane-shifted windows of the flat slab; destinations are
        # 8-sublane and 128-lane aligned -> unmasked full-width stores.
        for b in range(bs):
            xin = x_ref[b]                              # (Cp, Lpad), lane-dense
            col0 = b * Npad
            for d in range(ndy):
                for dx in range(k):
                    t = d * k + dx
                    off = d * Wp + dx
                    xim_ref[t * Cp:(t + 1) * Cp, col0:col0 + Npad] = xin[:, off:off + Npad]

        # Single fused MXU dispatch: v_conv+v_fc and h_conv+v_to_h∘v_conv, biases
        # broadcast-added (no ones-row, no persistent scratch state).
        big = jnp.dot(wbig_ref[...], xim_ref[...],
                      preferred_element_type=jnp.float32) + bbig_ref[...]   # (4Co, bs*Npad)

        v_pre = big[0:2 * Co, :]          # sublane slices only (8-aligned)
        h_pre = big[2 * Co:4 * Co, :]

        def gate(pre):                    # sigmoid(x) = 0.5*(1 + tanh(x/2)) -> 2 tanh on EUP
            return jnp.tanh(pre[:Co, :]) * (0.5 * (1.0 + jnp.tanh(0.5 * pre[Co:, :])))

        v_gate = gate(v_pre)              # (Co, bs*Npad)
        h_gate = gate(h_pre)

        # h_fc (masked 1x1) — the only other MXU dispatch.
        h_out = jnp.dot(wsml_ref[...], h_gate,
                        preferred_element_type=jnp.float32) + bsml_ref[...]

        for b in range(bs):               # 128-aligned lane slices, unmasked stores
            out_ref[b, 0, :, :] = v_gate[:, b * Npad:(b + 1) * Npad]
            out_ref[b, 1, :, :] = h_out[:, b * Npad:(b + 1) * Npad]

    out = pl.pallas_call(
        kernel,
        grid=(G,),
        in_specs=[
            pl.BlockSpec((bs, Cp, Lpad), lambda g: (g, 0, 0)),
            pl.BlockSpec(w_big.shape, lambda g: (0, 0)),
            pl.BlockSpec(b_big.shape, lambda g: (0, 0)),
            pl.BlockSpec(w_small.shape, lambda g: (0, 0)),
            pl.BlockSpec(b_small.shape, lambda g: (0, 0)),
        ],
        out_specs=pl.BlockSpec((bs, 2, Co, Npad), lambda g: (g, 0, 0, 0)),
        out_shape=jax.ShapeDtypeStruct((B, 2, Co, Npad), jnp.float32),
        scratch_shapes=[pltpu.VMEM((Kt, bs * Npad), jnp.float32)],
        compiler_params=pltpu.CompilerParams(dimension_semantics=("parallel",)),
    )(slab, w_big, b_big, w_small, b_small)

    # Strip lane padding / contaminated wraparound columns (>= W) and split outputs.
    out = out[..., :HWp].reshape(B, 2, Co, H, Wp)[..., :W]
    return out[:, 0], out[:, 1]


# ----------------------------------------------------------------------------
# Pure-JAX NCHW reference (mirrors the PyTorch forward exactly) for validation.
# ----------------------------------------------------------------------------
def causal_block_reference(x_nchw, params, *, kernel_size, out_channels):
    k, Co = kernel_size, out_channels
    kh = k // 2 + 1
    pw = k // 2

    def conv(x, w, b, pad_h, pad_w):
        y = lax.conv_general_dilated(
            x, w, window_strides=(1, 1),
            padding=((pad_h, pad_h), (pad_w, pad_w)),
            dimension_numbers=('NCHW', 'OIHW', 'NCHW'),
            precision=lax.Precision.HIGHEST)
        return y + b[None, :, None, None]

    xv = conv(x_nchw, params['v_conv_w'], params['v_conv_b'], kh, pw)
    res = xv[:, :, 1:-kh, :]
    shifted = xv[:, :, :-kh - 1, :]
    v_pre = res + conv(x_nchw, params['v_fc_w'], params['v_fc_b'], 0, 0)
    v_out = jnp.tanh(v_pre[:, :Co]) * jax.nn.sigmoid(v_pre[:, Co:])
    h_pre = conv(x_nchw, params['h_conv_w'], params['h_conv_b'], 0, pw)
    h_pre = h_pre + conv(shifted, params['v_to_h_w'], params['v_to_h_b'], 0, 0)
    h_gate = jnp.tanh(h_pre[:, :Co]) * jax.nn.sigmoid(h_pre[:, Co:])
    h_out = conv(h_gate, params['h_fc_w'], params['h_fc_b'], 0, 0)
    return v_out, h_out


if __name__ == "__main__":
    B, Cin, H, W = 2, 4, 16, 16      # image: NCHW (2, 4, 16, 16)
    Co = 8                           # out_channels
    k = 3                            # kernel_size
    dc = 4                           # data_channels
    kh = k // 2 + 1

    key = jax.random.PRNGKey(0)
    keys = jax.random.split(key, 11)

    def rnd(kk, shape, scale=0.1):
        return (scale * jax.random.normal(kk, shape)).astype(jnp.float32)

    h_conv_mask = jnp.asarray(_build_pixelcnn_mask(2 * Co, Cin, 1, k, 'A', dc))
    h_fc_mask = jnp.asarray(_build_pixelcnn_mask(Co, Co, 1, 1, 'A', dc))

    # Masks pre-applied to weights (MaskedConv2d multiplies weights by the mask
    # before every conv; equivalent for fixed weights).
    params = {
        'v_conv_w': rnd(keys[0], (2 * Co, Cin, kh, k)),
        'v_conv_b': rnd(keys[1], (2 * Co,)),
        'v_fc_w':   rnd(keys[2], (2 * Co, Cin, 1, 1)),
        'v_fc_b':   rnd(keys[3], (2 * Co,)),
        'v_to_h_w': rnd(keys[4], (2 * Co, 2 * Co, 1, 1)),
        'v_to_h_b': rnd(keys[5], (2 * Co,)),
        'h_conv_w': rnd(keys[6], (2 * Co, Cin, 1, k)) * h_conv_mask,
        'h_conv_b': rnd(keys[7], (2 * Co,)),
        'h_fc_w':   rnd(keys[8], (Co, Co, 1, 1)) * h_fc_mask,
        'h_fc_b':   rnd(keys[9], (Co,)),
    }

    x_nchw = jax.random.normal(keys[10], (B, Cin, H, W), jnp.float32)

    v_out, h_out = causal_block_pallas(x_nchw, params, kernel_size=k, out_channels=Co)
    jax.block_until_ready((v_out, h_out))

    # Validate against the NCHW reference.
    v_ref, h_ref = causal_block_reference(x_nchw, params, kernel_size=k, out_channels=Co)
    np.testing.assert_allclose(np.asarray(v_out), np.asarray(v_ref), rtol=2e-3, atol=2e-3)
    np.testing.assert_allclose(np.asarray(h_out), np.asarray(h_ref), rtol=2e-3, atol=2e-3)

    print("KERNEL_OK")
</pallas_src>

<mosaic_0001>
module attributes {stable_mosaic.version = 11 : i64} {
  func.func @kernel(%arg0: i32, %arg1: memref<2x8x512xf32, #tpu.memory_space<vmem>>, %arg2: memref<32x72xf32, #tpu.memory_space<vmem>>, %arg3: memref<32x1xf32, #tpu.memory_space<vmem>>, %arg4: memref<8x8xf32, #tpu.memory_space<vmem>>, %arg5: memref<8x1xf32, #tpu.memory_space<vmem>>, %arg6: memref<2x2x8x384xf32, #tpu.memory_space<vmem>>, %arg7: memref<72x768xf32, #tpu.memory_space<vmem>>) attributes {dimension_semantics = [#tpu.dimension_semantics<parallel>], iteration_bounds = array<i64: 1>, scalar_prefetch = 0 : i64, scratch_operands = 1 : i64, tpu.core_type = #tpu.core_type<tc>, window_params = [{transform_indices = @transform_0, window_bounds = array<i64: 2, 8, 512>}, {pipeline_mode = #tpu.pipeline_mode<synchronous>, transform_indices = @transform_1, window_bounds = array<i64: 32, 72>}, {pipeline_mode = #tpu.pipeline_mode<synchronous>, transform_indices = @transform_2, window_bounds = array<i64: 32, 1>}, {pipeline_mode = #tpu.pipeline_mode<synchronous>, transform_indices = @transform_3, window_bounds = array<i64: 8, 8>}, {pipeline_mode = #tpu.pipeline_mode<synchronous>, transform_indices = @transform_4, window_bounds = array<i64: 8, 1>}, {transform_indices = @transform_5, window_bounds = array<i64: 2, 2, 8, 384>}]} {
    %c0 = arith.constant 0 : index
    %c0_0 = arith.constant 0 : index
    %c0_1 = arith.constant 0 : index
    %0 = vector.load %arg1[%c0, %c0_0, %c0_1] : memref<2x8x512xf32, #tpu.memory_space<vmem>>, vector<1x8x512xf32>
    %1 = vector.shape_cast %0 : vector<1x8x512xf32> to vector<8x512xf32>
    %2 = vector.extract_strided_slice %1 {offsets = [0, 0], sizes = [8, 384], strides = [1, 1]} : vector<8x512xf32> to vector<8x384xf32>
    %c0_2 = arith.constant 0 : index
    %c0_3 = arith.constant 0 : index
    %3 = vector.load %arg7[%c0_2, %c0_3] : memref<72x768xf32, #tpu.memory_space<vmem>>, vector<8x384xf32>
    tpu.vector_store %arg7[%c0_2, %c0_3], %2 {strides = array<i32>} : memref<72x768xf32, #tpu.memory_space<vmem>>, vector<8x384xf32>,
    %4 = vector.extract_strided_slice %1 {offsets = [0, 1], sizes = [8, 384], strides = [1, 1]} : vector<8x512xf32> to vector<8x384xf32>
    %c8 = arith.constant 8 : index
    %c0_4 = arith.constant 0 : index
    %5 = vector.load %arg7[%c8, %c0_4] : memref<72x768xf32, #tpu.memory_space<vmem>>, vector<8x384xf32>
    tpu.vector_store %arg7[%c8, %c0_4], %4 {strides = array<i32>} : memref<72x768xf32, #tpu.memory_space<vmem>>, vector<8x384xf32>,
    %6 = vector.extract_strided_slice %1 {offsets = [0, 2], sizes = [8, 384], strides = [1, 1]} : vector<8x512xf32> to vector<8x384xf32>
    %c16 = arith.constant 16 : index
    %c0_5 = arith.constant 0 : index
    %7 = vector.load %arg7[%c16, %c0_5] : memref<72x768xf32, #tpu.memory_space<vmem>>, vector<8x384xf32>
    tpu.vector_store %arg7[%c16, %c0_5], %6 {strides = array<i32>} : memref<72x768xf32, #tpu.memory_space<vmem>>, vector<8x384xf32>,
    %8 = vector.extract_strided_slice %1 {offsets = [0, 18], sizes = [8, 384], strides = [1, 1]} : vector<8x512xf32> to vector<8x384xf32>
    %c24 = arith.constant 24 : index
    %c0_6 = arith.constant 0 : index
    %9 = vector.load %arg7[%c24, %c0_6] : memref<72x768xf32, #tpu.memory_space<vmem>>, vector<8x384xf32>
    tpu.vector_store %arg7[%c24, %c0_6], %8 {strides = array<i32>} : memref<72x768xf32, #tpu.memory_space<vmem>>, vector<8x384xf32>,
    %10 = vector.extract_strided_slice %1 {offsets = [0, 19], sizes = [8, 384], strides = [1, 1]} : vector<8x512xf32> to vector<8x384xf32>
    %c32 = arith.constant 32 : index
    %c0_7 = arith.constant 0 : index
    %11 = vector.load %arg7[%c32, %c0_7] : memref<72x768xf32, #tpu.memory_space<vmem>>, vector<8x384xf32>
    tpu.vector_store %arg7[%c32, %c0_7], %10 {strides = array<i32>} : memref<72x768xf32, #tpu.memory_space<vmem>>, vector<8x384xf32>,
    %12 = vector.extract_strided_slice %1 {offsets = [0, 20], sizes = [8, 384], strides = [1, 1]} : vector<8x512xf32> to vector<8x384xf32>
    %c40 = arith.constant 40 : index
    %c0_8 = arith.constant 0 : index
    %13 = vector.load %arg7[%c40, %c0_8] : memref<72x768xf32, #tpu.memory_space<vmem>>, vector<8x384xf32>
    tpu.vector_store %arg7[%c40, %c0_8], %12 {strides = array<i32>} : memref<72x768xf32, #tpu.memory_space<vmem>>, vector<8x384xf32>,
    %14 = vector.extract_strided_slice %1 {offsets = [0, 36], sizes = [8, 384], strides = [1, 1]} : vector<8x512xf32> to vector<8x384xf32>
    %c48 = arith.constant 48 : index
    %c0_9 = arith.constant 0 : index
    %15 = vector.load %arg7[%c48, %c0_9] : memref<72x768xf32, #tpu.memory_space<vmem>>, vector<8x384xf32>
    tpu.vector_store %arg7[%c48, %c0_9], %14 {strides = array<i32>} : memref<72x768xf32, #tpu.memory_space<vmem>>, vector<8x384xf32>,
    %16 = vector.extract_strided_slice %1 {offsets = [0, 37], sizes = [8, 384], strides = [1, 1]} : vector<8x512xf32> to vector<8x384xf32>
    %c56 = arith.constant 56 : index
    %c0_10 = arith.constant 0 : index
    %17 = vector.load %arg7[%c56, %c0_10] : memref<72x768xf32, #tpu.memory_space<vmem>>, vector<8x384xf32>
    tpu.vector_store %arg7[%c56, %c0_10], %16 {strides = array<i32>} : memref<72x768xf32, #tpu.memory_space<vmem>>, vector<8x384xf32>,
    %18 = vector.extract_strided_slice %1 {offsets = [0, 38], sizes = [8, 384], strides = [1, 1]} : vector<8x512xf32> to vector<8x384xf32>
    %c64 = arith.constant 64 : index
    %c0_11 = arith.constant 0 : index
    %19 = vector.load %arg7[%c64, %c0_11] : memref<72x768xf32, #tpu.memory_space<vmem>>, vector<8x384xf32>
    tpu.vector_store %arg7[%c64, %c0_11], %18 {strides = array<i32>} : memref<72x768xf32, #tpu.memory_space<vmem>>, vector<8x384xf32>,
    %c1 = arith.constant 1 : index
    %c0_12 = arith.constant 0 : index
    %c0_13 = arith.constant 0 : index
    %20 = vector.load %arg1[%c1, %c0_12, %c0_13] : memref<2x8x512xf32, #tpu.memory_space<vmem>>, vector<1x8x512xf32>
    %21 = vector.shape_cast %20 : vector<1x8x512xf32> to vector<8x512xf32>
    %22 = vector.extract_strided_slice %21 {offsets = [0, 0], sizes = [8, 384], strides = [1, 1]} : vector<8x512xf32> to vector<8x384xf32>
    %c0_14 = arith.constant 0 : index
    %c384 = arith.constant 384 : index
    %23 = vector.load %arg7[%c0_14, %c384] : memref<72x768xf32, #tpu.memory_space<vmem>>, vector<8x384xf32>
    tpu.vector_store %arg7[%c0_14, %c384], %22 {strides = array<i32>} : memref<72x768xf32, #tpu.memory_space<vmem>>, vector<8x384xf32>,
    %24 = vector.extract_strided_slice %21 {offsets = [0, 1], sizes = [8, 384], strides = [1, 1]} : vector<8x512xf32> to vector<8x384xf32>
    %c8_15 = arith.constant 8 : index
    %c384_16 = arith.constant 384 : index
    %25 = vector.load %arg7[%c8_15, %c384_16] : memref<72x768xf32, #tpu.memory_space<vmem>>, vector<8x384xf32>
    tpu.vector_store %arg7[%c8_15, %c384_16], %24 {strides = array<i32>} : memref<72x768xf32, #tpu.memory_space<vmem>>, vector<8x384xf32>,
    %26 = vector.extract_strided_slice %21 {offsets = [0, 2], sizes = [8, 384], strides = [1, 1]} : vector<8x512xf32> to vector<8x384xf32>
    %c16_17 = arith.constant 16 : index
    %c384_18 = arith.constant 384 : index
    %27 = vector.load %arg7[%c16_17, %c384_18] : memref<72x768xf32, #tpu.memory_space<vmem>>, vector<8x384xf32>
    tpu.vector_store %arg7[%c16_17, %c384_18], %26 {strides = array<i32>} : memref<72x768xf32, #tpu.memory_space<vmem>>, vector<8x384xf32>,
    %28 = vector.extract_strided_slice %21 {offsets = [0, 18], sizes = [8, 384], strides = [1, 1]} : vector<8x512xf32> to vector<8x384xf32>
    %c24_19 = arith.constant 24 : index
    %c384_20 = arith.constant 384 : index
    %29 = vector.load %arg7[%c24_19, %c384_20] : memref<72x768xf32, #tpu.memory_space<vmem>>, vector<8x384xf32>
    tpu.vector_store %arg7[%c24_19, %c384_20], %28 {strides = array<i32>} : memref<72x768xf32, #tpu.memory_space<vmem>>, vector<8x384xf32>,
    %30 = vector.extract_strided_slice %21 {offsets = [0, 19], sizes = [8, 384], strides = [1, 1]} : vector<8x512xf32> to vector<8x384xf32>
    %c32_21 = arith.constant 32 : index
    %c384_22 = arith.constant 384 : index
    %31 = vector.load %arg7[%c32_21, %c384_22] : memref<72x768xf32, #tpu.memory_space<vmem>>, vector<8x384xf32>
    tpu.vector_store %arg7[%c32_21, %c384_22], %30 {strides = array<i32>} : memref<72x768xf32, #tpu.memory_space<vmem>>, vector<8x384xf32>,
    %32 = vector.extract_strided_slice %21 {offsets = [0, 20], sizes = [8, 384], strides = [1, 1]} : vector<8x512xf32> to vector<8x384xf32>
    %c40_23 = arith.constant 40 : index
    %c384_24 = arith.constant 384 : index
    %33 = vector.load %arg7[%c40_23, %c384_24] : memref<72x768xf32, #tpu.memory_space<vmem>>, vector<8x384xf32>
    tpu.vector_store %arg7[%c40_23, %c384_24], %32 {strides = array<i32>} : memref<72x768xf32, #tpu.memory_space<vmem>>, vector<8x384xf32>,
    %34 = vector.extract_strided_slice %21 {offsets = [0, 36], sizes = [8, 384], strides = [1, 1]} : vector<8x512xf32> to vector<8x384xf32>
    %c48_25 = arith.constant 48 : index
    %c384_26 = arith.constant 384 : index
    %35 = vector.load %arg7[%c48_25, %c384_26] : memref<72x768xf32, #tpu.memory_space<vmem>>, vector<8x384xf32>
    tpu.vector_store %arg7[%c48_25, %c384_26], %34 {strides = array<i32>} : memref<72x768xf32, #tpu.memory_space<vmem>>, vector<8x384xf32>,
    %36 = vector.extract_strided_slice %21 {offsets = [0, 37], sizes = [8, 384], strides = [1, 1]} : vector<8x512xf32> to vector<8x384xf32>
    %c56_27 = arith.constant 56 : index
    %c384_28 = arith.constant 384 : index
    %37 = vector.load %arg7[%c56_27, %c384_28] : memref<72x768xf32, #tpu.memory_space<vmem>>, vector<8x384xf32>
    tpu.vector_store %arg7[%c56_27, %c384_28], %36 {strides = array<i32>} : memref<72x768xf32, #tpu.memory_space<vmem>>, vector<8x384xf32>,
    %38 = vector.extract_strided_slice %21 {offsets = [0, 38], sizes = [8, 384], strides = [1, 1]} : vector<8x512xf32> to vector<8x384xf32>
    %c64_29 = arith.constant 64 : index
    %c384_30 = arith.constant 384 : index
    %39 = vector.load %arg7[%c64_29, %c384_30] : memref<72x768xf32, #tpu.memory_space<vmem>>, vector<8x384xf32>
    tpu.vector_store %arg7[%c64_29, %c384_30], %38 {strides = array<i32>} : memref<72x768xf32, #tpu.memory_space<vmem>>, vector<8x384xf32>,
    %c0_31 = arith.constant 0 : index
    %c0_32 = arith.constant 0 : index
    %40 = vector.load %arg2[%c0_31, %c0_32] : memref<32x72xf32, #tpu.memory_space<vmem>>, vector<32x72xf32>
    %c0_33 = arith.constant 0 : index
    %c0_34 = arith.constant 0 : index
    %41 = vector.load %arg7[%c0_33, %c0_34] : memref<72x768xf32, #tpu.memory_space<vmem>>, vector<72x768xf32>
    %cst = arith.constant dense<0.000000e+00> : vector<32x768xf32>
    %42 = tpu.matmul %40, %41, %cst {dimension_numbers = #tpu.dot_dimension_numbers<[1], [0], [0], [1], [0, 0, 1, 1], [], []>} : vector<32x72xf32>, vector<72x768xf32>, vector<32x768xf32> -> vector<32x768xf32>
    %c0_35 = arith.constant 0 : index
    %c0_36 = arith.constant 0 : index
    %43 = vector.load %arg3[%c0_35, %c0_36] : memref<32x1xf32, #tpu.memory_space<vmem>>, vector<32x1xf32>
    %44 = vector.broadcast %43 : vector<32x1xf32> to vector<32x768xf32>
    %45 = arith.addf %42, %44 : vector<32x768xf32>
    %46 = vector.extract_strided_slice %45 {offsets = [0, 0], sizes = [16, 768], strides = [1, 1]} : vector<32x768xf32> to vector<16x768xf32>
    %47 = vector.extract_strided_slice %45 {offsets = [16, 0], sizes = [16, 768], strides = [1, 1]} : vector<32x768xf32> to vector<16x768xf32>
    %48 = vector.extract_strided_slice %46 {offsets = [0, 0], sizes = [8, 768], strides = [1, 1]} : vector<16x768xf32> to vector<8x768xf32>
    %49 = math.tanh %48 : vector<8x768xf32>
    %50 = vector.extract_strided_slice %46 {offsets = [8, 0], sizes = [8, 768], strides = [1, 1]} : vector<16x768xf32> to vector<8x768xf32>
    %cst_37 = arith.constant 5.000000e-01 : f32
    %51 = vector.broadcast %cst_37 : f32 to vector<8x768xf32>
    %52 = arith.mulf %51, %50 : vector<8x768xf32>
    %53 = math.tanh %52 : vector<8x768xf32>
    %cst_38 = arith.constant 1.000000e+00 : f32
    %54 = vector.broadcast %cst_38 : f32 to vector<8x768xf32>
    %55 = arith.addf %54, %53 : vector<8x768xf32>
    %cst_39 = arith.constant 5.000000e-01 : f32
    %56 = vector.broadcast %cst_39 : f32 to vector<8x768xf32>
    %57 = arith.mulf %56, %55 : vector<8x768xf32>
    %58 = arith.mulf %49, %57 : vector<8x768xf32>
    %59 = vector.extract_strided_slice %47 {offsets = [0, 0], sizes = [8, 768], strides = [1, 1]} : vector<16x768xf32> to vector<8x768xf32>
    %60 = math.tanh %59 : vector<8x768xf32>
    %61 = vector.extract_strided_slice %47 {offsets = [8, 0], sizes = [8, 768], strides = [1, 1]} : vector<16x768xf32> to vector<8x768xf32>
    %cst_40 = arith.constant 5.000000e-01 : f32
    %62 = vector.broadcast %cst_40 : f32 to vector<8x768xf32>
    %63 = arith.mulf %62, %61 : vector<8x768xf32>
    %64 = math.tanh %63 : vector<8x768xf32>
    %cst_41 = arith.constant 1.000000e+00 : f32
    %65 = vector.broadcast %cst_41 : f32 to vector<8x768xf32>
    %66 = arith.addf %65, %64 : vector<8x768xf32>
    %cst_42 = arith.constant 5.000000e-01 : f32
    %67 = vector.broadcast %cst_42 : f32 to vector<8x768xf32>
    %68 = arith.mulf %67, %66 : vector<8x768xf32>
    %69 = arith.mulf %60, %68 : vector<8x768xf32>
    %c0_43 = arith.constant 0 : index
    %c0_44 = arith.constant 0 : index
    %70 = vector.load %arg4[%c0_43, %c0_44] : memref<8x8xf32, #tpu.memory_space<vmem>>, vector<8x8xf32>
    %cst_45 = arith.constant dense<0.000000e+00> : vector<8x768xf32>
    %71 = tpu.matmul %70, %69, %cst_45 {dimension_numbers = #tpu.dot_dimension_numbers<[1], [0], [0], [1], [0, 0, 1, 1], [], []>} : vector<8x8xf32>, vector<8x768xf32>, vector<8x768xf32> -> vector<8x768xf32>
    %c0_46 = arith.constant 0 : index
    %c0_47 = arith.constant 0 : index
    %72 = vector.load %arg5[%c0_46, %c0_47] : memref<8x1xf32, #tpu.memory_space<vmem>>, vector<8x1xf32>
    %73 = vector.broadcast %72 : vector<8x1xf32> to vector<8x768xf32>
    %74 = arith.addf %71, %73 : vector<8x768xf32>
    %75 = vector.extract_strided_slice %58 {offsets = [0, 0], sizes = [8, 384], strides = [1, 1]} : vector<8x768xf32> to vector<8x384xf32>
    %c0_48 = arith.constant 0 : index
    %c0_49 = arith.constant 0 : index
    %c0_50 = arith.constant 0 : index
    %c0_51 = arith.constant 0 : index
    %76 = vector.load %arg6[%c0_48, %c0_49, %c0_50, %c0_51] : memref<2x2x8x384xf32, #tpu.memory_space<vmem>>, vector<1x1x8x384xf32>
    %77 = vector.shape_cast %76 : vector<1x1x8x384xf32> to vector<8x384xf32>
    %78 = vector.shape_cast %75 : vector<8x384xf32> to vector<1x1x8x384xf32>
    tpu.vector_store %arg6[%c0_48, %c0_49, %c0_50, %c0_51], %78 {strides = array<i32>} : memref<2x2x8x384xf32, #tpu.memory_space<vmem>>, vector<1x1x8x384xf32>,
    %79 = vector.extract_strided_slice %74 {offsets = [0, 0], sizes = [8, 384], strides = [1, 1]} : vector<8x768xf32> to vector<8x384xf32>
    %c0_52 = arith.constant 0 : index
    %c1_53 = arith.constant 1 : index
    %c0_54 = arith.constant 0 : index
    %c0_55 = arith.constant 0 : index
    %80 = vector.load %arg6[%c0_52, %c1_53, %c0_54, %c0_55] : memref<2x2x8x384xf32, #tpu.memory_space<vmem>>, vector<1x1x8x384xf32>
    %81 = vector.shape_cast %80 : vector<1x1x8x384xf32> to vector<8x384xf32>
    %82 = vector.shape_cast %79 : vector<8x384xf32> to vector<1x1x8x384xf32>
    tpu.vector_store %arg6[%c0_52, %c1_53, %c0_54, %c0_55], %82 {strides = array<i32>} : memref<2x2x8x384xf32, #tpu.memory_space<vmem>>, vector<1x1x8x384xf32>,
    %83 = vector.extract_strided_slice %58 {offsets = [0, 384], sizes = [8, 384], strides = [1, 1]} : vector<8x768xf32> to vector<8x384xf32>
    %c1_56 = arith.constant 1 : index
    %c0_57 = arith.constant 0 : index
    %c0_58 = arith.constant 0 : index
    %c0_59 = arith.constant 0 : index
    %84 = vector.load %arg6[%c1_56, %c0_57, %c0_58, %c0_59] : memref<2x2x8x384xf32, #tpu.memory_space<vmem>>, vector<1x1x8x384xf32>
    %85 = vector.shape_cast %84 : vector<1x1x8x384xf32> to vector<8x384xf32>
    %86 = vector.shape_cast %83 : vector<8x384xf32> to vector<1x1x8x384xf32>
    tpu.vector_store %arg6[%c1_56, %c0_57, %c0_58, %c0_59], %86 {strides = array<i32>} : memref<2x2x8x384xf32, #tpu.memory_space<vmem>>, vector<1x1x8x384xf32>,
    %87 = vector.extract_strided_slice %74 {offsets = [0, 384], sizes = [8, 384], strides = [1, 1]} : vector<8x768xf32> to vector<8x384xf32>
    %c1_60 = arith.constant 1 : index
    %c1_61 = arith.constant 1 : index
    %c0_62 = arith.constant 0 : index
    %c0_63 = arith.constant 0 : index
    %88 = vector.load %arg6[%c1_60, %c1_61, %c0_62, %c0_63] : memref<2x2x8x384xf32, #tpu.memory_space<vmem>>, vector<1x1x8x384xf32>
    %89 = vector.shape_cast %88 : vector<1x1x8x384xf32> to vector<8x384xf32>
    %90 = vector.shape_cast %87 : vector<8x384xf32> to vector<1x1x8x384xf32>
    tpu.vector_store %arg6[%c1_60, %c1_61, %c0_62, %c0_63], %90 {strides = array<i32>} : memref<2x2x8x384xf32, #tpu.memory_space<vmem>>, vector<1x1x8x384xf32>,
    return
  }
  func.func @transform_0(%arg0: i32) -> (i32, i32, i32) {
    %c0_i32 = arith.constant 0 : i32
    %c0_i32_0 = arith.constant 0 : i32
    %c0_i32_1 = arith.constant 0 : i32
    return %arg0, %c0_i32, %c0_i32_0 : i32, i32, i32
  }
  func.func @transform_1(%arg0: i32) -> (i32, i32) {
    %c0_i32 = arith.constant 0 : i32
    %c0_i32_0 = arith.constant 0 : i32
    %c0_i32_1 = arith.constant 0 : i32
    return %c0_i32, %c0_i32_0 : i32, i32
  }
  func.func @transform_2(%arg0: i32) -> (i32, i32) {
    %c0_i32 = arith.constant 0 : i32
    %c0_i32_0 = arith.constant 0 : i32
    %c0_i32_1 = arith.constant 0 : i32
    return %c0_i32, %c0_i32_0 : i32, i32
  }
  func.func @transform_3(%arg0: i32) -> (i32, i32) {
    %c0_i32 = arith.constant 0 : i32
    %c0_i32_0 = arith.constant 0 : i32
    %c0_i32_1 = arith.constant 0 : i32
    return %c0_i32, %c0_i32_0 : i32, i32
  }
  func.func @transform_4(%arg0: i32) -> (i32, i32) {
    %c0_i32 = arith.constant 0 : i32
    %c0_i32_0 = arith.constant 0 : i32
    %c0_i32_1 = arith.constant 0 : i32
    return %c0_i32, %c0_i32_0 : i32, i32
  }
  func.func @transform_5(%arg0: i32) -> (i32, i32, i32, i32) {
    %c0_i32 = arith.constant 0 : i32
    %c0_i32_0 = arith.constant 0 : i32
    %c0_i32_1 = arith.constant 0 : i32
    %c0_i32_2 = arith.constant 0 : i32
    return %arg0, %c0_i32, %c0_i32_0, %c0_i32_1 : i32, i32, i32, i32
  }
}

</mosaic_0001>

<bundles_post_ra>
// kernel: _causal_block_fused.1
= control target key start
LH: loop header
LB: loop body
LE: loop exit
PB: predicated region body
PF: predicated region fallthrough
CT: control target
= control target key end

     0   :  { %s1276_s26 = smov 126   ;;  %s1277_s27 = smov 127   ;;  %v1284_v12 = vmov 0.0   ;;  %v1285_v13 = vmov 0   ;;  %vm39_vm0 = vcmask 1039360   ;;  %vm57_vm1 = vcmask 1031168   ;;  %s1683_s0 = inlined_call_operand.vmem [shape: f32[2,8,512], index: 0, kind: input, shape index: {}]   ;;  %s1684_s2 = inlined_call_operand.vmem [shape: f32[32,1], index: 2, kind: input, shape index: {}]   ;;  %s1685_s4 = inlined_call_operand.vmem [shape: f32[8,1], index: 4, kind: input, shape index: {}]   ;;  %s1686_s1 = inlined_call_operand.vmem [shape: f32[32,72], index: 1, kind: input, shape index: {}]   ;;  %s1687_s5 = inlined_call_operand.vmem [shape: f32[2,2,8,384], index: 5, kind: output, shape index: {}]   ;;  %s1688_s3 = inlined_call_operand.vmem [shape: f32[8,8], index: 3, kind: input, shape index: {}]  }
   0x1   :  { %v1319_v0 = vld [vmem:[%s1683_s0 + $0x8] sm:$0xff]  ;;  %v1324_v1 = vld [vmem:[%s1683_s0 + $0x10] sm:$0xff]  ;;  %v1329_v2 = vld [vmem:[%s1683_s0] sm:$0xff]  ;;  %s1278_s28 = smov 110   ;;  %s1279_s29 = smov 108   ;;  %482 = vmatprep.mubr.f32.mxu0 %v1284_v12  ;;  %571 = vmatprep.mubr.f32.mxu1 %v1284_v12  ;;  %vm75_vm2 = vcmask 900096  }
   0x2   :  { %v1096_v3 = vpack.i.bf16 %v1324_v1, %v1319_v0  ;;  %v1336_v4 = vld [vmem:[%s1683_s0 + $0x20] sm:$0xff]  ;;  %s1280_s30 = smov 109   ;;  %s1281_s6 = smov 91   ;;  %v23_v6 = vld [vmem:[%s1683_s0 + $0x18] sm:$0xff]  ;;  %v1357_v7 = vld [vmem:[%s1683_s0 + $0x28] sm:$0xff]  ;;  %1227 = vset.pattern.permute.xlu1 %v1285_v13  ;;  %1226 = vset.pattern.permute.xlu0 %v1285_v13  ;;  %vm93_vm3 = vcmask 891904  }
   0x3   :  { %v1091_v5 = vpack.i.bf16 %v1336_v4, %v1329_v2  ;;  %s1282_s7 = smov 92   ;;  %v1156_v8 = vpack.i.bf16 %v23_v6, %v1357_v7  ;;  %v1364_v9 = vld [vmem:[%s1683_s0 + $0x30] sm:$0xff]  ;;  %v1003_v10 = vld [vmem:[%s1683_s0 + $0x38] sm:$0xff]  ;;  %s1283_s16 = smov 90   ;;  %v382_v16 = vld [vmem:[%s1684_s2 + $0x8] sm:$0xff]  ;;  %vm111_vm4 = vcmask 883712  }
   0x4   :  { %1097 = vrot.lane.b32.xlu1 %v1096_v3, %s1276_s26  ;;  %1087 = vrot.lane.b32.xlu0 %v1096_v3, %s1277_s27  ;;  %v1161_v11 = vpack.i.bf16 %v1003_v10, %v1364_v9  ;;  %v383_v14 = vld [vmem:[%s1684_s2 + $0x10] sm:$0xff]  ;;  %v384_v15 = vld [vmem:[%s1684_s2 + $0x18] sm:$0xff]  ;;  %vm129_vm5 = vcmask 752640   ;;  %vm147_vm6 = vcmask 744448   ;;  %vm165_vm7 = vcmask 736256  }
   0x5   :  { %v381_v17 = vld [vmem:[%s1684_s2] sm:$0xff]  ;;  %vm405_vm8 = vcmask 588800   ;;  %vm764_vm9 = vcmask 64512  }
   0x6   :  { %v758_v18 = vld [vmem:[%s1685_s4] sm:$0xff] }
   0x8   :  { %1102 = vrot.lane.b32.xlu1 %v1096_v3, %s1278_s28  ;;  %1092 = vrot.lane.b32.xlu0 %v1091_v5, %s1277_s27 }
   0xc   :  { %1112 = vrot.lane.b32.xlu1 %v1091_v5, %s1278_s28  ;;  %1107 = vrot.lane.b32.xlu0 %v1091_v5, %s1276_s26 }
  0x10   :  { %1122 = vrot.lane.b32.xlu1 %v1096_v3, %s1279_s29  ;;  %1117 = vrot.lane.b32.xlu0 %v1096_v3, %s1280_s30 }
  0x14   :  { %1132 = vrot.lane.b32.xlu1 %v1091_v5, %s1279_s29  ;;  %1127 = vrot.lane.b32.xlu0 %v1091_v5, %s1280_s30 }
  0x18   :  { %1142 = vrot.lane.b32.xlu1 %v1096_v3, %s1281_s6  ;;  %1137 = vrot.lane.b32.xlu0 %v1096_v3, %s1282_s7 }
  0x1c   :  { %1152 = vrot.lane.b32.xlu1 %v1091_v5, %s1281_s6  ;;  %1147 = vrot.lane.b32.xlu0 %v1091_v5, %s1282_s7 }
  0x20   :  { %159 = vrot.lane.b32.xlu1 %v1319_v0, %s1283_s16  ;;  %1157 = vrot.lane.b32.xlu0 %v1156_v8, %s1277_s27 }
  0x24   :  { %1162 = vrot.lane.b32.xlu1 %v1161_v11, %s1277_s27  ;;  %161 = vrot.lane.b32.xlu0 %v1324_v1, %s1283_s16 }
  0x28   :  { %1172 = vrot.lane.b32.xlu1 %v1156_v8, %s1278_s28  ;;  %1167 = vrot.lane.b32.xlu0 %v1156_v8, %s1276_s26 }
  0x2c   :  { %1177 = vrot.lane.b32.xlu1 %v1161_v11, %s1276_s26  ;;  %157 = vrot.lane.b32.xlu0 %v1329_v2, %s1283_s16 }
  0x30   :  { %1187 = vrot.lane.b32.xlu1 %v1156_v8, %s1280_s30  ;;  %1182 = vrot.lane.b32.xlu0 %v1161_v11, %s1278_s28 }
  0x34   :  { %1197 = vrot.lane.b32.xlu1 %v1161_v11, %s1280_s30  ;;  %1192 = vrot.lane.b32.xlu0 %v1156_v8, %s1279_s29 }
  0x38   :  { %1207 = vrot.lane.b32.xlu1 %v1156_v8, %s1282_s7  ;;  %1202 = vrot.lane.b32.xlu0 %v1161_v11, %s1279_s29 }
  0x3c   :  { %1217 = vrot.lane.b32.xlu1 %v1161_v11, %s1282_s7  ;;  %1212 = vrot.lane.b32.xlu0 %v1156_v8, %s1281_s6 }
  0x40   :  { %306 = vrot.lane.b32.xlu1 %v1336_v4, %s1283_s16  ;;  %1222 = vrot.lane.b32.xlu0 %v1161_v11, %s1281_s6 }
  0x44   :  { %163 = vrot.lane.b32.xlu1 %v23_v6, %s1283_s16  ;;  %308 = vrot.lane.b32.xlu0 %v1357_v7, %s1283_s16 }
  0x48   :  { %312 = vrot.lane.b32.xlu1 %v1003_v10, %s1283_s16  ;;  %310 = vrot.lane.b32.xlu0 %v1364_v9, %s1283_s16 }
  0x4c   :  { %397 = vperm.xlu1 %1227, %v383_v14   ;;  %402 = vperm.xlu0 %1226, %v384_v15  }
  0x50   :  { %392 = vperm.xlu1 %1227, %v382_v16   ;;  %387 = vperm.xlu0 %1226, %v381_v17  }
  0x54   :  { %761 = vperm.xlu1 %1227, %v758_v18  }
  0x76   :  { %v1405_v19 = vpop.permute.xlu1 %1097  ;;  %v1407_v20 = vpop.permute.xlu0 %1087 }
  0x77   :  { %v1090_v21 = vunpack.i.h.bf16 %v1407_v20  ;;  %v1089_v22 = vunpack.i.l.bf16 %v1407_v20  ;;  %v1100_v23 = vunpack.i.h.bf16 %v1405_v19  ;;  %v1099_v24 = vunpack.i.l.bf16 %v1405_v19 }
  0x79   :  { %v41_v25 = vsel %vm39_vm0, %v1089_v22, %v1090_v21  ;;  %v59_v33 = vsel %vm57_vm1, %v1099_v24, %v1100_v23 }
  0x7a   :  { %v1416_v26 = vpop.permute.xlu1 %1102  ;;  %v1418_v27 = vpop.permute.xlu0 %1092  ;;  %v1028_v28 = vpack.c.bf16 %v41_v25, %v1319_v0 }
  0x7b   :  { %v1105_v29 = vunpack.i.h.bf16 %v1416_v26  ;;  %v1104_v30 = vunpack.i.l.bf16 %v1416_v26  ;;  %v1094_v31 = vunpack.i.l.bf16 %v1418_v27 }
  0x7c   :  { %1029 = vmatprep.subr.bf16.mxu0 %v1028_v28 }
  0x7d   :  { %v40_v32 = vsel %vm39_vm0, %v1094_v31, %v1089_v22  ;;  %v77_v34 = vsel %vm75_vm2, %v1104_v30, %v1105_v29  ;;  %v1095_v22 = vunpack.i.h.bf16 %v1418_v27 }
  0x7e   :  { %v1431_v35 = vpop.permute.xlu1 %1112  ;;  %v1433_v36 = vpop.permute.xlu0 %1107  ;;  %v1030_v37 = vpack.c.bf16 %v40_v32, %v1329_v2  ;;  %v1032_v38 = vpack.c.bf16 %v77_v34, %v59_v33 }
  0x7f   :  { %v1114_v39 = vunpack.i.l.bf16 %v1431_v35  ;;  %v1109_v40 = vunpack.i.l.bf16 %v1433_v36  ;;  %v1110_v20 = vunpack.i.h.bf16 %v1433_v36 }
  0x80   :  { %1031 = vmatpush1.bf16.msra.mxu0 %v1030_v37 }
  0x81   :  { %1033 = vmatprep.subr.bf16.mxu0 %v1032_v38  ;;  %v58_v41 = vsel %vm57_vm1, %v1109_v40, %v1099_v24  ;;  %v76_v42 = vsel %vm75_vm2, %v1114_v39, %v1104_v30  ;;  %v1115_v39 = vunpack.i.h.bf16 %v1431_v35 }
  0x82   :  { %v1440_v43 = vpop.permute.xlu1 %1122  ;;  %v1442_v44 = vpop.permute.xlu0 %1117  ;;  %v1034_v45 = vpack.c.bf16 %v76_v42, %v58_v41 }
  0x83   :  { %v1125_v46 = vunpack.i.h.bf16 %v1440_v43  ;;  %v1124_v47 = vunpack.i.l.bf16 %v1440_v43  ;;  %v1120_v48 = vunpack.i.h.bf16 %v1442_v44  ;;  %v1119_v49 = vunpack.i.l.bf16 %v1442_v44 }
  0x84   :  { %1035 = vmatpush1.bf16.msra.mxu0 %v1034_v45 }
  0x85   :  { %v95_v50 = vsel %vm93_vm3, %v1119_v49, %v1120_v48  ;;  %v113_v51 = vsel %vm111_vm4, %v1124_v47, %v1125_v46 }
  0x86   :  { %v1454_v52 = vpop.permute.xlu1 %1132  ;;  %v1456_v53 = vpop.permute.xlu0 %1127  ;;  %v1036_v54 = vpack.c.bf16 %v113_v51, %v95_v50 }
  0x87   :  { %v1134_v55 = vunpack.i.l.bf16 %v1454_v52  ;;  %v1129_v56 = vunpack.i.l.bf16 %v1456_v53 }
  0x88   :  { %1037 = vmatprep.subr.bf16.mxu0 %v1036_v54 }
  0x89   :  { %v94_v57 = vsel %vm93_vm3, %v1129_v56, %v1119_v49  ;;  %v112_v58 = vsel %vm111_vm4, %v1134_v55, %v1124_v47  ;;  %v1510_v56 = vld [vmem:[%s1686_s1] sm:$0xff] }
  0x8a   :  { %v1462_v59 = vpop.permute.xlu1 %1142  ;;  %v1464_v60 = vpop.permute.xlu0 %1137  ;;  %v1038_v61 = vpack.c.bf16 %v112_v58, %v94_v57 }
  0x8b   :  { %v1145_v62 = vunpack.i.h.bf16 %v1462_v59  ;;  %v1144_v63 = vunpack.i.l.bf16 %v1462_v59  ;;  %v1140_v0 = vunpack.i.h.bf16 %v1464_v60  ;;  %v1139_v2 = vunpack.i.l.bf16 %v1464_v60 }
  0x8c   :  { %1039 = vmatpush1.bf16.msra.mxu0 %v1038_v61 }
  0x8d   :  { %v131_v3 = vsel %vm129_vm5, %v1139_v2, %v1140_v0  ;;  %v149_v5 = vsel %vm147_vm6, %v1144_v63, %v1145_v62 }
  0x8e   :  { %v1476_v6 = vpop.permute.xlu1 %1152  ;;  %v1478_v8 = vpop.permute.xlu0 %1147  ;;  %v1040_v10 = vpack.c.bf16 %v149_v5, %v131_v3 }
  0x8f   :  { %v1154_v11 = vunpack.i.l.bf16 %v1476_v6  ;;  %v1149_v13 = vunpack.i.l.bf16 %v1478_v8 }
  0x90   :  { %1041 = vmatprep.subr.bf16.mxu0 %v1040_v10 }
  0x91   :  { %v130_v14 = vsel %vm129_vm5, %v1149_v13, %v1139_v2  ;;  %v148_v15 = vsel %vm147_vm6, %v1154_v11, %v1144_v63  ;;  %v1521_v2 = vld [vmem:[%s1686_s1 + $0x8] sm:$0xff] }
  0x92   :  { %v160_v16 = vpop.permute.xlu1 %159  ;;  %v1158_v17 = vpop.permute.xlu0 %1157  ;;  %v1042_v18 = vpack.c.bf16 %v148_v15, %v130_v14  ;;  %v1130_v15 = vunpack.i.h.bf16 %v1456_v53 }
  0x93   :  { %v1160_v24 = vunpack.i.h.bf16 %v1158_v17  ;;  %v1159_v25 = vunpack.i.l.bf16 %v1158_v17 }
  0x94   :  { %1043 = vmatpush1.bf16.msra.mxu0 %v1042_v18 }
  0x95   :  { %v195_v28 = vsel %vm39_vm0, %v1095_v22, %v1159_v25  ;;  %v42_v30 = vsel %vm39_vm0, %v1090_v21, %v1160_v24  ;;  %v1534_v24 = vld [vmem:[%s1686_s1 + $0x10] sm:$0xff] }
  0x96   :  { %v1163_v31 = vpop.permute.xlu1 %1162  ;;  %v1489_v32 = vpop.permute.xlu0 %161  ;;  %v1044_v33 = vpack.c.bf16 %v195_v28, %v1336_v4  ;;  %v1046_v34 = vpack.c.bf16 %v42_v30, %v1324_v1 }
  0x97   :  { %v167_v27 = vsel %vm165_vm7, %v160_v16, %v1489_v32  ;;  %v1165_v37 = vunpack.i.h.bf16 %v1163_v31  ;;  %v1164_v38 = vunpack.i.l.bf16 %v1163_v31 }
  0x98   :  { %434 = vmatprep.subr.mxu0 %v167_v27  ;;  %1045 = vmatprep.subr.bf16.mxu1 %v1044_v33 }
  0x99   :  { %1047 = vmatpush1.bf16.msra.mxu1 %v1046_v34  ;;  %v197_v1 = vsel %vm39_vm0, %v1164_v38, %v1165_v37  ;;  %v196_v36 = vsel %vm39_vm0, %v1159_v25, %v1164_v38  ;;  %v1135_v25 = vunpack.i.h.bf16 %v1454_v52 }
  0x9a   :  { %v1173_v21 = vpop.permute.xlu1 %1172  ;;  %v1168_v40 = vpop.permute.xlu0 %1167  ;;  %v1062_v26 = vpack.c.bf16 %v196_v36, %v1357_v7 }
  0x9b   :  { %v1175_v41 = vunpack.i.h.bf16 %v1173_v21  ;;  %v1174_v42 = vunpack.i.l.bf16 %v1173_v21  ;;  %v1170_v45 = vunpack.i.h.bf16 %v1168_v40  ;;  %v1169_v4 = vunpack.i.l.bf16 %v1168_v40 }
  0x9d   :  { %v212_v47 = vsel %vm57_vm1, %v1110_v20, %v1169_v4  ;;  %v229_v49 = vsel %vm75_vm2, %v1115_v39, %v1174_v42  ;;  %v60_v50 = vsel %vm57_vm1, %v1100_v23, %v1170_v45  ;;  %v78_v35 = vsel %vm75_vm2, %v1105_v29, %v1175_v41  ;;  %v1551_v20 = vld [vmem:[%s1686_s1 + $0x18] sm:$0xff] }
  0x9e   :  { %v1178_v51 = vpop.permute.xlu1 %1177  ;;  %v158_v54 = vpop.permute.xlu0 %157  ;;  %v1048_v55 = vpack.c.bf16 %v229_v49, %v212_v47  ;;  %v1050_v57 = vpack.c.bf16 %v78_v35, %v60_v50  ;;  %v1060_v23 = vpack.c.bf16 %v197_v1, %v1364_v9  ;;  %v1155_v35 = vunpack.i.h.bf16 %v1476_v6 }
  0x9f   :  { %v166_v19 = vsel %vm165_vm7, %v158_v54, %v160_v16  ;;  %v1179_v58 = vunpack.i.l.bf16 %v1178_v51  ;;  %v1180_v29 = vunpack.i.h.bf16 %v1178_v51 }
  0xa0   :  { %435 = vmatpush1.msra.mxu0 %v166_v19  ;;  %1049 = vmatprep.subr.bf16.mxu1 %v1048_v55 }
  0xa1   :  { %1004 = vmatmul.mubr.msk.f32.vlgmr.msra.gmra.mrb[0].mxu0 %vm405_vm8, %v1510_v56  ;;  %1051 = vmatpush1.bf16.msra.mxu1 %v1050_v57  ;;  %v213_v7 = vsel %vm57_vm1, %v1169_v4, %v1179_v58  ;;  %v214_v13 = vsel %vm57_vm1, %v1179_v58, %v1180_v29  ;;  %v1150_v4 = vunpack.i.h.bf16 %v1478_v8 }
  0xa2   :  { %1061 = vmatprep.subr.bf16.mxu0 %v1060_v23  ;;  %v1188_v61 = vpop.permute.xlu1 %1187  ;;  %v1183_v63 = vpop.permute.xlu0 %1182  ;;  %488 = vmatprep.mubr.f32.mxu0 %v1284_v12 }
  0xa3   :  { %v1185_v3 = vunpack.i.h.bf16 %v1183_v63  ;;  %v1184_v5 = vunpack.i.l.bf16 %v1183_v63  ;;  %1063 = vmatpush1.bf16.msra.mxu0 %v1062_v26  ;;  %v1189_v9 = vunpack.i.l.bf16 %v1188_v61  ;;  %v1190_v10 = vunpack.i.h.bf16 %v1188_v61 }
  0xa5   :  { %v230_v11 = vsel %vm75_vm2, %v1174_v42, %v1184_v5  ;;  %1005 = vmatmul.mubr.msk.f32.gmra.mrb[2].mxu0 %vm405_vm8, %v1521_v2  ;;  %v231_v14 = vsel %vm75_vm2, %v1184_v5, %v1185_v3  ;;  %v246_v33 = vsel %vm93_vm3, %v1130_v15, %v1189_v9  ;;  %v96_v27 = vsel %vm93_vm3, %v1120_v48, %v1190_v10 }
  0xa6   :  { %v1066_v16 = vpack.c.bf16 %v230_v11, %v213_v7  ;;  %v1198_v17 = vpop.permute.xlu1 %1197  ;;  %v1193_v18 = vpop.permute.xlu0 %1192  ;;  %494 = vmatprep.mubr.f32.mxu0 %v1284_v12  ;;  %v1064_v22 = vpack.c.bf16 %v231_v14, %v214_v13 }
  0xa7   :  { %v1195_v28 = vunpack.i.h.bf16 %v1193_v18  ;;  %v1194_v30 = vunpack.i.l.bf16 %v1193_v18  ;;  %v1199_v31 = vunpack.i.l.bf16 %v1198_v17  ;;  %v1200_v53 = vunpack.i.h.bf16 %v1198_v17 }
  0xa8   :  { %1065 = vmatprep.subr.bf16.mxu0 %v1064_v22 }
  0xa9   :  { %1006 = vmatmul.mubr.msk.f32.gmra.mrb[4].mxu0 %vm405_vm8, %v1534_v24  ;;  %v263_v34 = vsel %vm111_vm4, %v1135_v25, %v1194_v30  ;;  %v114_v52 = vsel %vm111_vm4, %v1125_v46, %v1195_v28  ;;  %v247_v48 = vsel %vm93_vm3, %v1189_v9, %v1199_v31  ;;  %v248_v42 = vsel %vm93_vm3, %v1199_v31, %v1200_v53 }
  0xaa   :  { %1067 = vmatpush1.bf16.msra.mxu0 %v1066_v16  ;;  %v1208_v37 = vpop.permute.xlu1 %1207  ;;  %v1203_v38 = vpop.permute.xlu0 %1202  ;;  %500 = vmatprep.mubr.f32.mxu0 %v1284_v12  ;;  %v1052_v39 = vpack.c.bf16 %v263_v34, %v246_v33  ;;  %v1054_v21 = vpack.c.bf16 %v114_v52, %v96_v27 }
  0xab   :  { %v1205_v40 = vunpack.i.h.bf16 %v1203_v38  ;;  %v1204_v44 = vunpack.i.l.bf16 %v1203_v38  ;;  %v1210_v41 = vunpack.i.h.bf16 %v1208_v37  ;;  %v1209_v43 = vunpack.i.l.bf16 %v1208_v37 }
  0xac   :  { %1053 = vmatprep.subr.bf16.mxu1 %v1052_v39 }
  0xad   :  { %v264_v46 = vsel %vm111_vm4, %v1194_v30, %v1204_v44  ;;  %1007 = vmatmul.mubr.msk.f32.gmra.mrb[6].mxu0 %vm405_vm8, %v1551_v20  ;;  %1055 = vmatpush1.bf16.msra.mxu1 %v1054_v21  ;;  %v265_v45 = vsel %vm111_vm4, %v1204_v44, %v1205_v40  ;;  %v280_v54 = vsel %vm129_vm5, %v1150_v4, %v1209_v43 }
  0xae   :  { %v1070_v1 = vpack.c.bf16 %v264_v46, %v247_v48  ;;  %v1218_v47 = vpop.permute.xlu1 %1217  ;;  %v1213_v49 = vpop.permute.xlu0 %1212  ;;  %v1068_v50 = vpack.c.bf16 %v265_v45, %v248_v42  ;;  %660 = vmatprep.mubr.f32.mxu0 %v1284_v12  ;;  %v132_v55 = vsel %vm129_vm5, %v1140_v0, %v1210_v41 }
  0xaf   :  { %v1215_v36 = vunpack.i.h.bf16 %v1213_v49  ;;  %v1214_v51 = vunpack.i.l.bf16 %v1213_v49  ;;  %v1220_v57 = vunpack.i.h.bf16 %v1218_v47  ;;  %v1219_v19 = vunpack.i.l.bf16 %v1218_v47 }
  0xb0   :  { %1069 = vmatprep.subr.bf16.mxu0 %v1068_v50 }
  0xb1   :  { %1071 = vmatpush1.bf16.msra.mxu0 %v1070_v1  ;;  %v297_v8 = vsel %vm147_vm6, %v1155_v35, %v1214_v51  ;;  %v150_v58 = vsel %vm147_vm6, %v1145_v62, %v1215_v36  ;;  %v281_v60 = vsel %vm129_vm5, %v1209_v43, %v1219_v19  ;;  %v282_v3 = vsel %vm129_vm5, %v1219_v19, %v1220_v57 }
  0xb2   :  { %v307_v23 = vpop.permute.xlu1 %306  ;;  %v1223_v6 = vpop.permute.xlu0 %1222  ;;  %v1056_v26 = vpack.c.bf16 %v297_v8, %v280_v54  ;;  %v1058_v29 = vpack.c.bf16 %v150_v58, %v132_v55 }
  0xb3   :  { %v1225_v61 = vunpack.i.h.bf16 %v1223_v6  ;;  %v1224_v63 = vunpack.i.l.bf16 %v1223_v6 }
  0xb4   :  { %1057 = vmatprep.subr.bf16.mxu1 %v1056_v26 }
  0xb5   :  { %v298_v0 = vsel %vm147_vm6, %v1214_v51, %v1224_v63  ;;  %1059 = vmatpush1.bf16.msra.mxu1 %v1058_v29  ;;  %v299_v5 = vsel %vm147_vm6, %v1224_v63, %v1225_v61 }
  0xb6   :  { %v1074_v7 = vpack.c.bf16 %v298_v0, %v281_v60  ;;  %v164_v59 = vpop.permute.xlu1 %163  ;;  %v309_v9 = vpop.permute.xlu0 %308  ;;  %v1072_v62 = vpack.c.bf16 %v299_v5, %v282_v3 }
  0xb7   :  { %v314_v10 = vsel %vm165_vm7, %v307_v23, %v309_v9  ;;  %v168_v11 = vsel %vm165_vm7, %v1489_v32, %v164_v59 }
  0xb8   :  { %523 = vmatprep.subr.mxu1 %v314_v10  ;;  %1073 = vmatprep.subr.bf16.mxu0 %v1072_v62 }
  0xb9   :  { %524 = vmatpush1.msra.mxu1 %v168_v11  ;;  %1075 = vmatpush1.bf16.msra.mxu0 %v1074_v7 }
  0xba   :  { %v313_v13 = vpop.permute.xlu1 %312  ;;  %v311_v14 = vpop.permute.xlu0 %310  ;;  %1008 = vmatmul.mubr.msk.f32.vlgmr.msra.gmra.mrb[0].mxu1 %vm405_vm8, %v1510_v56 }
  0xbb   :  { %v315_v15 = vsel %vm165_vm7, %v309_v9, %v311_v14  ;;  %v316_v16 = vsel %vm165_vm7, %v311_v14, %v313_v13  ;;  %577 = vmatprep.mubr.f32.mxu1 %v1284_v12 }
  0xbc   :  { %612 = vmatprep.subr.mxu0 %v316_v16 }
  0xbd   :  { %613 = vmatpush1.msra.mxu0 %v315_v15  ;;  %v1632_v15 = vld [vmem:[%s1688_s3] sm:$0xff] }
  0xbe   :  { %1009 = vmatmul.mubr.msk.f32.gmra.mrb[2].mxu1 %vm405_vm8, %v1521_v2  ;;  %1012 = vmatmul.mubr.msk.f32.vlgmr.msra.gmra.mrb[8].mxu0 %vm405_vm8, %v1510_v56 }
  0xbf   :  { %583 = vmatprep.mubr.f32.mxu1 %v1284_v12  ;;  %666 = vmatprep.mubr.f32.mxu0 %v1284_v12 }
  0xc2   :  { %1010 = vmatmul.mubr.msk.f32.gmra.mrb[4].mxu1 %vm405_vm8, %v1534_v24  ;;  %1013 = vmatmul.mubr.msk.f32.gmra.mrb[10].mxu0 %vm405_vm8, %v1521_v2 }
  0xc3   :  { %589 = vmatprep.mubr.f32.mxu1 %v1284_v12  ;;  %672 = vmatprep.mubr.f32.mxu0 %v1284_v12 }
  0xc6   :  { %1011 = vmatmul.mubr.msk.f32.gmra.mrb[6].mxu1 %vm405_vm8, %v1551_v20  ;;  %1014 = vmatmul.mubr.msk.f32.gmra.mrb[12].mxu0 %vm405_vm8, %v1534_v24 }
  0xc7   :  { %678 = vmatprep.mubr.f32.mxu0 %v1284_v12  ;;  %832 = vmatprep.mubr.f32.mxu1 %v1284_v12 }
  0xca   :  { %1015 = vmatmul.mubr.msk.f32.gmra.mrb[14].mxu0 %vm405_vm8, %v1551_v20 }
  0xcb   :  { %v1602_v32 = vpop.permute.xlu1 %397  ;;  %v1604_v56 = vpop.permute.xlu0 %402 }
  0xcf   :  { %v1606_v18 = vpop.permute.xlu1 %392  ;;  %v1608_v25 = vpop.permute.xlu0 %387 }
 0x174   :  { %v484_v2 = vpop.f32.mrb[0].mxu0 }
 0x175   :  { %v486_v17 = vpop.f32.mrb[1].mxu0  ;;  %v485_v33 = vadd.f32 %v484_v2, %v1608_v25 }
 0x176   :  { %v487_v34 = vadd.f32 %v486_v17, %v1608_v25 }
 0x178   :  { %v490_v22 = vpop.f32.mrb[2].mxu0 }
 0x179   :  { %v491_v24 = vadd.f32 %v490_v22, %v1606_v18  ;;  %v492_v28 = vpop.f32.mrb[3].mxu0 }
 0x17a   :  { %v493_v30 = vadd.f32 %v492_v28, %v1606_v18 }
 0x17b   :  { %v691_v31 = vmul.f32 0.5, %v491_v24 }
 0x17c   :  { %v692_v53 = vmul.f32 0.5, %v493_v30  ;;  %v496_v27 = vpop.f32.mrb[4].mxu0 }
 0x17d   :  { %1228 = vtanh.f32 %v691_v31  ;;  %v498_v52 = vpop.f32.mrb[5].mxu0  ;;  %v497_v21 = vadd.f32 %v496_v27, %v1602_v32 }
 0x17e   :  { %1230 = vtanh.f32 %v692_v53  ;;  %v499_v44 = vadd.f32 %v498_v52, %v1602_v32 }
 0x17f   :  { %1232 = vtanh.f32 %v485_v33 }
 0x180   :  { %1234 = vtanh.f32 %v487_v34  ;;  %v502_v37 = vpop.f32.mrb[6].mxu0 }
 0x181   :  { %v503_v38 = vadd.f32 %v502_v37, %v1604_v56  ;;  %v504_v39 = vpop.f32.mrb[7].mxu0 }
 0x182   :  { %v505_v20 = vadd.f32 %v504_v39, %v1604_v56 }
 0x183   :  { %v727_v40 = vmul.f32 0.5, %v503_v38 }
 0x184   :  { %v728_v48 = vmul.f32 0.5, %v505_v20 }
 0x185   :  { %1236 = vtanh.f32 %v727_v40 }
 0x186   :  { %1238 = vtanh.f32 %v728_v48 }
 0x187   :  { %v1229_v41 = vpop.eup %1228  ;;  %1240 = vtanh.f32 %v497_v21 }
 0x188   :  { %v1231_v43 = vpop.eup %1230  ;;  %v703_v46 = vadd.f32 1.0, %v1229_v41  ;;  %1242 = vtanh.f32 %v499_v44 }
 0x189   :  { %v1233_v42 = vpop.eup %1232  ;;  %v704_v45 = vadd.f32 1.0, %v1231_v43 }
 0x18a   :  { %v1235_v4 = vpop.eup %1234  ;;  %v709_v1 = vmul.f32 0.5, %v703_v46 }
 0x18b   :  { %v710_v47 = vmul.f32 0.5, %v704_v45 }
 0x18c   :  { %v715_v49 = vmul.f32 %v1233_v42, %v709_v1 }
 0x18d   :  { %v716_v50 = vmul.f32 %v1235_v4, %v710_v47  ;;  %v573_v35 = vpop.f32.mrb[0].mxu1 }
 0x18e   :  { %981 = vst [vmem:[%s1687_s5] sm:$0xff] %v715_v49  ;;  %v575_v36 = vpop.f32.mrb[1].mxu1  ;;  %v574_v3 = vadd.f32 %v573_v35, %v1608_v25 }
 0x18f   :  { %v1237_v51 = vpop.eup %1236  ;;  %982 = vst [vmem:[%s1687_s5 + $0x8] sm:$0xff] %v716_v50  ;;  %v576_v7 = vadd.f32 %v575_v36, %v1608_v25 }
 0x190   :  { %v1239_v54 = vpop.eup %1238  ;;  %v739_v55 = vadd.f32 1.0, %v1237_v51 }
 0x191   :  { %v1241_v57 = vpop.eup %1240  ;;  %v740_v19 = vadd.f32 1.0, %v1239_v54  ;;  %v579_v8 = vpop.f32.mrb[2].mxu1 }
 0x192   :  { %v662_v58 = vpop.f32.mrb[8].mxu0  ;;  %v1243_v23 = vpop.eup %1242  ;;  %v745_v6 = vmul.f32 0.5, %v739_v55  ;;  %v580_v26 = vadd.f32 %v579_v8, %v1606_v18 }
 0x193   :  { %v581_v29 = vpop.f32.mrb[3].mxu1  ;;  %v664_v61 = vpop.f32.mrb[9].mxu0  ;;  %v746_v63 = vmul.f32 0.5, %v740_v19  ;;  %v663_v2 = vadd.f32 %v662_v58, %v1608_v25 }
 0x194   :  { %v582_v60 = vadd.f32 %v581_v29, %v1606_v18  ;;  %v751_v0 = vmul.f32 %v1241_v57, %v745_v6  ;;  %v693_v5 = vmul.f32 0.5, %v580_v26  ;;  %v665_v22 = vadd.f32 %v664_v61, %v1608_v25 }
 0x195   :  { %v585_v9 = vpop.f32.mrb[4].mxu1  ;;  %v668_v62 = vpop.f32.mrb[10].mxu0  ;;  %v752_v10 = vmul.f32 %v1243_v23, %v746_v63 }
 0x196   :  { %v694_v59 = vmul.f32 0.5, %v582_v60  ;;  %1244 = vtanh.f32 %v693_v5  ;;  %v669_v11 = vadd.f32 %v668_v62, %v1606_v18  ;;  %v587_v13 = vpop.f32.mrb[5].mxu1  ;;  %v670_v14 = vpop.f32.mrb[11].mxu0  ;;  %v586_v34 = vadd.f32 %v585_v9, %v1602_v32 }
 0x197   :  { %v671_v16 = vadd.f32 %v670_v14, %v1606_v18  ;;  %768 = vmatprep.subr.mxu1 %v752_v10  ;;  %v588_v27 = vadd.f32 %v587_v13, %v1602_v32 }
 0x198   :  { %1246 = vtanh.f32 %v694_v59  ;;  %v695_v17 = vmul.f32 0.5, %v669_v11  ;;  %769 = vmatpush1.msra.mxu1 %v751_v0 }
 0x199   :  { %1248 = vtanh.f32 %v574_v3  ;;  %v696_v24 = vmul.f32 0.5, %v671_v16  ;;  %v591_v28 = vpop.f32.mrb[6].mxu1  ;;  %v674_v30 = vpop.f32.mrb[12].mxu0  ;;  %1016 = vmatmul.mubr.msk.f32.vlgmr.msra.gmra.mrb[8].mxu1 %vm764_vm9, %v1632_v15 }
 0x19a   :  { %1250 = vtanh.f32 %v576_v7  ;;  %v592_v31 = vadd.f32 %v591_v28, %v1604_v56  ;;  %v593_v33 = vpop.f32.mrb[7].mxu1  ;;  %v676_v18 = vpop.f32.mrb[13].mxu0  ;;  %903 = vmatprep.mubr.f32.mxu1 %v1284_v12  ;;  %v675_v42 = vadd.f32 %v674_v30, %v1602_v32 }
 0x19b   :  { %1252 = vtanh.f32 %v695_v17  ;;  %v594_v53 = vadd.f32 %v593_v33, %v1604_v56  ;;  %v677_v1 = vadd.f32 %v676_v18, %v1602_v32 }
 0x19c   :  { %1254 = vtanh.f32 %v696_v24  ;;  %v729_v25 = vmul.f32 0.5, %v592_v31 }
 0x19d   :  { %1256 = vtanh.f32 %v663_v2  ;;  %v730_v52 = vmul.f32 0.5, %v594_v53  ;;  %v680_v37 = vpop.f32.mrb[14].mxu0  ;;  %v762_v2 = vpop.permute.xlu1 %761 }
 0x19e   :  { %1258 = vtanh.f32 %v665_v22  ;;  %v681_v38 = vadd.f32 %v680_v37, %v1604_v56  ;;  %v682_v39 = vpop.f32.mrb[15].mxu0 }
 0x19f   :  { %1260 = vtanh.f32 %v729_v25  ;;  %v683_v20 = vadd.f32 %v682_v39, %v1604_v56 }
 0x1a0   :  { %1262 = vtanh.f32 %v730_v52  ;;  %v1245_v21 = vpop.eup %1244  ;;  %v731_v40 = vmul.f32 0.5, %v681_v38 }
 0x1a1   :  { %1264 = vtanh.f32 %v586_v34  ;;  %v705_v48 = vadd.f32 1.0, %v1245_v21  ;;  %v732_v41 = vmul.f32 0.5, %v683_v20 }
 0x1a2   :  { %v1247_v44 = vpop.eup %1246  ;;  %1266 = vtanh.f32 %v588_v27 }
 0x1a3   :  { %v1249_v43 = vpop.eup %1248  ;;  %v706_v46 = vadd.f32 1.0, %v1247_v44  ;;  %1268 = vtanh.f32 %v731_v40  ;;  %v711_v4 = vmul.f32 0.5, %v705_v48 }
 0x1a4   :  { %v1251_v45 = vpop.eup %1250  ;;  %1270 = vtanh.f32 %v732_v41 }
 0x1a5   :  { %v1253_v47 = vpop.eup %1252  ;;  %v712_v49 = vmul.f32 0.5, %v706_v46  ;;  %v717_v50 = vmul.f32 %v1249_v43, %v711_v4  ;;  %1272 = vtanh.f32 %v675_v42 }
 0x1a6   :  { %v1255_v56 = vpop.eup %1254  ;;  %v707_v35 = vadd.f32 1.0, %v1253_v47  ;;  %1274 = vtanh.f32 %v677_v1 }
 0x1a7   :  { %v1257_v36 = vpop.eup %1256  ;;  %v718_v51 = vmul.f32 %v1251_v45, %v712_v49  ;;  %v708_v54 = vadd.f32 1.0, %v1255_v56  ;;  %983 = vst [vmem:[%s1687_s5 + $0x10] sm:$0xff] %v717_v50 }
 0x1a8   :  { %v1259_v55 = vpop.eup %1258  ;;  %v713_v57 = vmul.f32 0.5, %v707_v35 }
 0x1a9   :  { %v1261_v19 = vpop.eup %1260  ;;  %1022 = vst [vmem:[%s1687_s5 + $0x30] sm:$0xff] %v718_v51  ;;  %v714_v32 = vmul.f32 0.5, %v708_v54 }
 0x1aa   :  { %v1263_v8 = vpop.eup %1262  ;;  %v719_v58 = vmul.f32 %v1257_v36, %v713_v57  ;;  %v741_v23 = vadd.f32 1.0, %v1261_v19 }
 0x1ab   :  { %v1265_v6 = vpop.eup %1264  ;;  %v720_v26 = vmul.f32 %v1259_v55, %v714_v32  ;;  %v742_v29 = vadd.f32 1.0, %v1263_v8 }
 0x1ac   :  { %v1267_v61 = vpop.eup %1266  ;;  %1023 = vst [vmem:[%s1687_s5 + $0x38] sm:$0xff] %v719_v58  ;;  %v747_v63 = vmul.f32 0.5, %v741_v23 }
 0x1ad   :  { %v1269_v60 = vpop.eup %1268  ;;  %1024 = vst [vmem:[%s1687_s5 + $0x40] sm:$0xff] %v720_v26  ;;  %v748_v0 = vmul.f32 0.5, %v742_v29 }
 0x1ae   :  { %v1271_v3 = vpop.eup %1270  ;;  %v753_v5 = vmul.f32 %v1265_v6, %v747_v63  ;;  %v743_v7 = vadd.f32 1.0, %v1269_v60 }
 0x1af   :  { %v744_v59 = vadd.f32 1.0, %v1271_v3  ;;  %v754_v9 = vmul.f32 %v1267_v61, %v748_v0  ;;  %v1273_v10 = vpop.eup %1272 }
 0x1b0   :  { %v749_v62 = vmul.f32 0.5, %v743_v7  ;;  %v1275_v13 = vpop.eup %1274 }
 0x1b1   :  { %v750_v11 = vmul.f32 0.5, %v744_v59  ;;  %839 = vmatprep.subr.mxu1 %v754_v9 }
 0x1b2   :  { %v755_v14 = vmul.f32 %v1273_v10, %v749_v62  ;;  %840 = vmatpush1.msra.mxu1 %v753_v5 }
 0x1b3   :  { %1017 = vmatmul.mubr.msk.f32.vlgmr.msra.gmra.mrb[10].mxu1 %vm764_vm9, %v1632_v15  ;;  %v756_v16 = vmul.f32 %v1275_v13, %v750_v11 }
 0x1b4   :  { %974 = vmatprep.mubr.f32.mxu1 %v1284_v12 }
 0x1b5   :  { %910 = vmatprep.subr.mxu1 %v756_v16 }
 0x1b6   :  { %911 = vmatpush1.msra.mxu1 %v755_v14 }
 0x1b7   :  { %1018 = vmatmul.mubr.msk.f32.vlgmr.msra.gmra.mrb[12].mxu1 %vm764_vm9, %v1632_v15 }
 0x26c   :  { %v834_v17 = vpop.f32.mrb[8].mxu1 }
 0x26d   :  { %v835_v22 = vadd.f32 %v834_v17, %v762_v2  ;;  %v836_v24 = vpop.f32.mrb[9].mxu1 }
 0x26e   :  { %v837_v28 = vadd.f32 %v836_v24, %v762_v2 }
 0x26f   :  { %1019 = vst [vmem:[%s1687_s5 + $0x18] sm:$0xff] %v835_v22 }
 0x270   :  { %1020 = vst [vmem:[%s1687_s5 + $0x20] sm:$0xff] %v837_v28 }
 0x286   :  { %v905_v30 = vpop.f32.mrb[10].mxu1 }
 0x287   :  { %v906_v12 = vadd.f32 %v905_v30, %v762_v2  ;;  %v907_v31 = vpop.f32.mrb[11].mxu1 }
 0x288   :  { %v908_v33 = vadd.f32 %v907_v31, %v762_v2 }
 0x289   :  { %1021 = vst [vmem:[%s1687_s5 + $0x28] sm:$0xff] %v906_v12 }
 0x28a   :  { %1025 = vst [vmem:[%s1687_s5 + $0x48] sm:$0xff] %v908_v33  ;;  %v976_v15 = vpop.f32.mrb[12].mxu1 }
 0x28b   :  { %v977_v18 = vadd.f32 %v976_v15, %v762_v2  ;;  %v978_v53 = vpop.f32.mrb[13].mxu1 }
 0x28c   :  { %v979_v34 = vadd.f32 %v978_v53, %v762_v2 }
 0x28d   :  { %1026 = vst [vmem:[%s1687_s5 + $0x50] sm:$0xff] %v977_v18 }
 0x28e   :  { %1027 = vst [vmem:[%s1687_s5 + $0x58] sm:$0xff] %v979_v34 }

</bundles_post_ra>
